<compile_context>
chip_gen: v6e
topology: v6e:2x2x1
jax: 0.10.0
libtpu: 0.0.40
codegen_flags: <defaults>
</compile_context>

<pallas_src>
import functools

import jax
import jax.numpy as jnp
from jax import lax
from jax.experimental import pallas as pl
from jax.experimental.pallas import tpu as pltpu


def _round_up(x: int, m: int) -> int:
    return ((x + m - 1) // m) * m


# ----------------------------------------------------------------------------- kernels
def _adapter_kernel(x_ref, w1_ref, w2_ref, out_ref, *, apply_relu: bool):
    """One (TM, H) row tile:  r = act(x @ W1.T) @ W2.T + x  (f32 accumulation)."""
    x = x_ref[...]
    # x @ W1.T == dot_general contracting dim 1 of x with dim 1 of W1 (out, in) -> no transpose
    a = lax.dot_general(x, w1_ref[...], (((1,), (1,)), ((), ())),
                        preferred_element_type=jnp.float32)
    if apply_relu:
        a = jnp.maximum(a, 0.0)
    a = a.astype(w2_ref.dtype)
    r = lax.dot_general(a, w2_ref[...], (((1,), (1,)), ((), ())),
                        preferred_element_type=jnp.float32)
    out_ref[...] = (r + x.astype(jnp.float32)).astype(out_ref.dtype)


def _single_proj_kernel(x_ref, w_ref, out_ref):
    """One (TM, H) row tile:  r = x @ W.T  (no residual)."""
    r = lax.dot_general(x_ref[...], w_ref[...], (((1,), (1,)), ((), ())),
                        preferred_element_type=jnp.float32)
    out_ref[...] = r.astype(out_ref.dtype)


# ----------------------------------------------------------------------------- wrapper
def adapter_layer(x, params, *, adapter_choice="LiST", tm=512, matmul_dtype=None):
    """x: (..., H).  Weights follow PyTorch nn.Linear convention (out_features, in_features)."""
    orig_shape = x.shape
    H = orig_shape[-1]
    M = 1
    for d in orig_shape[:-1]:
        M *= d
    x2 = x.reshape(M, H)

    out_dtype = x.dtype
    cdtype = matmul_dtype or x.dtype

    # Row tiling; pad M so every tile is full (no ragged / masked-store tail tile).
    TM = max(8, _round_up(min(tm, _round_up(M, 8)), 8))
    M_pad = _round_up(M, TM)
    if M_pad != M:
        x2 = jnp.pad(x2, ((0, M_pad - M), (0, 0)))
    x2 = x2.astype(cdtype)
    grid = (M_pad // TM,)

    if adapter_choice in ("LiST", "houlsby"):
        w1 = params["adapter_w1"].astype(cdtype)      # (A, H)
        w2 = params["adapter_w2"].astype(cdtype)      # (H, A)
        A = w1.shape[0]
        A_pad = _round_up(max(A, 128), 128)           # lane-dense intermediate, MXU-dense contraction
        if A_pad != A:
            w1 = jnp.pad(w1, ((0, A_pad - A), (0, 0)))
            w2 = jnp.pad(w2, ((0, 0), (0, A_pad - A)))
        kernel = functools.partial(_adapter_kernel,
                                   apply_relu=(adapter_choice == "houlsby"))
        weight_args = (w1, w2)
        weight_specs = [
            pl.BlockSpec((A_pad, H), lambda i: (0, 0)),   # W1, VMEM-resident
            pl.BlockSpec((H, A_pad), lambda i: (0, 0)),   # W2, VMEM-resident
        ]
        weight_elems = 2 * A_pad * H
    else:
        w = params["adapter_w1"].astype(cdtype)       # (H, H)
        kernel = _single_proj_kernel
        weight_args = (w,)
        weight_specs = [pl.BlockSpec((H, H), lambda i: (0, 0))]
        weight_elems = H * H

    # VMEM budget: double-buffered x + out tiles plus (double-buffered) resident weights.
    bpe = 4
    need = 2 * 2 * TM * H * bpe + 2 * weight_elems * bpe
    vmem_limit = int(min(max(2 * need, 32 << 20), 48 << 20))

    out = pl.pallas_call(
        kernel,
        out_shape=jax.ShapeDtypeStruct((M_pad, H), out_dtype),
        grid=grid,
        in_specs=[pl.BlockSpec((TM, H), lambda i: (i, 0))] + weight_specs,
        out_specs=pl.BlockSpec((TM, H), lambda i: (i, 0)),
        compiler_params=pltpu.CompilerParams(
            dimension_semantics=("parallel",),
            vmem_limit_bytes=vmem_limit,
        ),
    )(x2, *weight_args)

    return out[:M].reshape(orig_shape)


# ----------------------------------------------------------------------------- references
def _ref_list(x, w1, w2):
    return (x @ w1.T) @ w2.T + x


def _ref_houlsby(x, w1, w2):
    return jnp.maximum(x @ w1.T, 0.0) @ w2.T + x


def _ref_single(x, w):
    return x @ w.T


if __name__ == "__main__":
    B, S, H, A = 2, 8, 32, 16
    key = jax.random.PRNGKey(0)
    kx, k1, k2, k3 = jax.random.split(key, 4)

    x = jax.random.normal(kx, (B, S, H), jnp.float32)
    params = {
        "adapter_w1": jax.random.normal(k1, (A, H), jnp.float32) * 0.02,   # (out=A, in=H)
        "adapter_w2": jax.random.normal(k2, (H, A), jnp.float32) * 0.02,   # (out=H, in=A)
    }

    # LiST (module default)
    out = jax.block_until_ready(adapter_layer(x, params, adapter_choice="LiST"))
    ref = _ref_list(x, params["adapter_w1"], params["adapter_w2"])
    assert jnp.allclose(out, ref, atol=1e-4, rtol=1e-4), "LiST mismatch vs reference"

    # houlsby (ReLU between projections)
    out_h = jax.block_until_ready(adapter_layer(x, params, adapter_choice="houlsby"))
    ref_h = _ref_houlsby(x, params["adapter_w1"], params["adapter_w2"])
    assert jnp.allclose(out_h, ref_h, atol=1e-4, rtol=1e-4), "houlsby mismatch vs reference"

    # plain single projection ('other' branch)
    params_o = {"adapter_w1": jax.random.normal(k3, (H, H), jnp.float32) * 0.02}
    out_o = jax.block_until_ready(adapter_layer(x, params_o, adapter_choice="other"))
    ref_o = _ref_single(x, params_o["adapter_w1"])
    assert jnp.allclose(out_o, ref_o, atol=1e-4, rtol=1e-4), "single-proj mismatch vs reference"

    print("KERNEL_OK")
</pallas_src>

<mosaic_0001>
module attributes {stable_mosaic.version = 11 : i64} {
  func.func @_adapter_kernel(%arg0: i32, %arg1: memref<16x32xf32, #tpu.memory_space<vmem>>, %arg2: memref<128x32xf32, #tpu.memory_space<vmem>>, %arg3: memref<32x128xf32, #tpu.memory_space<vmem>>, %arg4: memref<16x32xf32, #tpu.memory_space<vmem>>) attributes {dimension_semantics = [#tpu.dimension_semantics<parallel>], iteration_bounds = array<i64: 1>, scalar_prefetch = 0 : i64, scratch_operands = 0 : i64, tpu.core_type = #tpu.core_type<tc>, window_params = [{transform_indices = @transform_0, window_bounds = array<i64: 16, 32>}, {pipeline_mode = #tpu.pipeline_mode<synchronous>, transform_indices = @transform_1, window_bounds = array<i64: 128, 32>}, {pipeline_mode = #tpu.pipeline_mode<synchronous>, transform_indices = @transform_2, window_bounds = array<i64: 32, 128>}, {transform_indices = @transform_3, window_bounds = array<i64: 16, 32>}]} {
    %c0 = arith.constant 0 : index
    %c0_0 = arith.constant 0 : index
    %0 = vector.load %arg1[%c0, %c0_0] : memref<16x32xf32, #tpu.memory_space<vmem>>, vector<16x32xf32>
    %c0_1 = arith.constant 0 : index
    %c0_2 = arith.constant 0 : index
    %1 = vector.load %arg2[%c0_1, %c0_2] : memref<128x32xf32, #tpu.memory_space<vmem>>, vector<128x32xf32>
    %cst = arith.constant dense<0.000000e+00> : vector<16x128xf32>
    %2 = tpu.matmul %0, %1, %cst {dimension_numbers = #tpu.dot_dimension_numbers<[1], [1], [0], [0], [0, 0, 1, 0], [], []>} : vector<16x32xf32>, vector<128x32xf32>, vector<16x128xf32> -> vector<16x128xf32>
    %c0_3 = arith.constant 0 : index
    %c0_4 = arith.constant 0 : index
    %3 = vector.load %arg3[%c0_3, %c0_4] : memref<32x128xf32, #tpu.memory_space<vmem>>, vector<32x128xf32>
    %cst_5 = arith.constant dense<0.000000e+00> : vector<16x32xf32>
    %4 = tpu.matmul %2, %3, %cst_5 {dimension_numbers = #tpu.dot_dimension_numbers<[1], [1], [0], [0], [0, 0, 1, 0], [], []>} : vector<16x128xf32>, vector<32x128xf32>, vector<16x32xf32> -> vector<16x32xf32>
    %5 = arith.addf %4, %0 : vector<16x32xf32>
    %c0_6 = arith.constant 0 : index
    %c0_7 = arith.constant 0 : index
    %6 = vector.load %arg4[%c0_6, %c0_7] : memref<16x32xf32, #tpu.memory_space<vmem>>, vector<16x32xf32>
    tpu.vector_store %arg4[%c0_6, %c0_7], %5 {strides = array<i32>} : memref<16x32xf32, #tpu.memory_space<vmem>>, vector<16x32xf32>,
    return
  }
  func.func @transform_0(%arg0: i32) -> (i32, i32) {
    %c0_i32 = arith.constant 0 : i32
    %c0_i32_0 = arith.constant 0 : i32
    return %arg0, %c0_i32 : i32, i32
  }
  func.func @transform_1(%arg0: i32) -> (i32, i32) {
    %c0_i32 = arith.constant 0 : i32
    %c0_i32_0 = arith.constant 0 : i32
    %c0_i32_1 = arith.constant 0 : i32
    return %c0_i32, %c0_i32_0 : i32, i32
  }
  func.func @transform_2(%arg0: i32) -> (i32, i32) {
    %c0_i32 = arith.constant 0 : i32
    %c0_i32_0 = arith.constant 0 : i32
    %c0_i32_1 = arith.constant 0 : i32
    return %c0_i32, %c0_i32_0 : i32, i32
  }
  func.func @transform_3(%arg0: i32) -> (i32, i32) {
    %c0_i32 = arith.constant 0 : i32
    %c0_i32_0 = arith.constant 0 : i32
    return %arg0, %c0_i32 : i32, i32
  }
}

</mosaic_0001>

<bundles_post_ra>
// kernel: tpu_custom_call.1
= control target key start
LH: loop header
LB: loop body
LE: loop exit
PB: predicated region body
PF: predicated region fallthrough
CT: control target
= control target key end

     0   :  { %vm33_vm0 = vcmask 261120   ;;  %s501_s0 = inlined_call_operand.vmem [shape: f32[16,32], index: 0, kind: input, shape index: {}]   ;;  %s502_s1 = inlined_call_operand.vmem [shape: f32[128,32], index: 1, kind: input, shape index: {}]   ;;  %s503_s2 = inlined_call_operand.vmem [shape: f32[32,128], index: 2, kind: input, shape index: {}]   ;;  %s504_s3 = inlined_call_operand.hbm [shape: f32[16,32], index: 3, kind: output, shape index: {}]  }
   0x1   :  { %v32_v0 = vld [vmem:[%s502_s1 + $0x78] sm:$0xff]  ;;  %v31_v1 = vld [vmem:[%s502_s1 + $0x70] sm:$0xff]  ;;  %v30_v2 = vld [vmem:[%s502_s1 + $0x68] sm:$0xff] }
   0x2   :  { %302 = vmatprep.subr.msk.mxu0 %vm33_vm0, %v32_v0  ;;  %v166_v3 = vld [vmem:[%s503_s2 + $0x18] sm:$0xff]  ;;  %v165_v4 = vld [vmem:[%s503_s2 + $0x10] sm:$0xff] }
   0x3   :  { %303 = vmatpush3.xpose.msk.msra.mxu0 %vm33_vm0, %v32_v0  ;;  %337 = vmatprep.subr.mxu1 %v166_v3 }
   0x4   :  { %304 = vmatprep.subr.msk.mxu0 %vm33_vm0, %v31_v1 }
   0x7   :  { %305 = vmatpush3.xpose.msk.msra.mxu0 %vm33_vm0, %v31_v1 }
   0x8   :  { %8 = vsyncpa [#allocation3], 0  ;;  %306 = vmatprep.subr.msk.mxu0 %vm33_vm0, %v30_v2  ;;  %338 = vmatpush3.xpose.msra.mxu1 %v166_v3  ;;  %v29_v5 = vld [vmem:[%s502_s1 + $0x60] sm:$0xff]  ;;  %v164_v6 = vld [vmem:[%s503_s2 + $0x8] sm:$0xff]  ;;  %s373_s28 = smov [#allocation2]  }
   0x9   :  { %339 = vmatprep.subr.mxu1 %v165_v4  ;;  %v28_v7 = vld [vmem:[%s502_s1 + $0x58] sm:$0xff]  ;;  %v27_v8 = vld [vmem:[%s502_s1 + $0x50] sm:$0xff]  ;;  %v26_v9 = vld [vmem:[%s502_s1 + $0x48] sm:$0xff]  ;;  %s249_s29 = sshll.u32 %s373_s28, 4  ;;  %s250_s29 = int_to_ptr.vmem [resolvable:$true] %s249_s29 }
   0xa   :  { %v25_v10 = vld [vmem:[%s502_s1 + $0x40] sm:$0xff]  ;;  %v24_v11 = vld [vmem:[%s502_s1 + $0x38] sm:$0xff]  ;;  %v23_v12 = vld [vmem:[%s502_s1 + $0x30] sm:$0xff]  ;;  %p356_p1 = scmp.lt.s32.totalorder %s250_s29, %s250_s29 }
   0xb   :  { %307 = vmatpush3.xpose.msk.msra.mxu0 %vm33_vm0, %v30_v2  ;;  %v22_v13 = vld [vmem:[%s502_s1 + $0x28] sm:$0xff]  ;;  %v21_v14 = vld [vmem:[%s502_s1 + $0x20] sm:$0xff]  ;;  %v20_v15 = vld [vmem:[%s502_s1 + $0x18] sm:$0xff] }
   0xc   :  { %308 = vmatprep.subr.msk.mxu0 %vm33_vm0, %v29_v5  ;;  %340 = vmatpush3.xpose.msra.mxu1 %v165_v4  ;;  %v19_v16 = vld [vmem:[%s502_s1 + $0x10] sm:$0xff]  ;;  %v18_v17 = vld [vmem:[%s502_s1 + $0x8] sm:$0xff]  ;;  %v17_v18 = vld [vmem:[%s502_s1] sm:$0xff] }
   0xd   :  { %341 = vmatprep.subr.mxu1 %v164_v6  ;;  %v16_v19 = vld [vmem:[%s501_s0 + $0x8] sm:$0xff]  ;;  %v163_v20 = vld [vmem:[%s503_s2] sm:$0xff]  ;;  %s351_s2 = scalar_lea.vmem %s250_s29, 256 }
   0xe   :  { %v15_v23 = vld [vmem:[%s501_s0] sm:$0xff]  ;;  %p352_p0 = scmp.ne.s32.totalorder %s250_s29, %s351_s2  ;;  %p357_p2 = scmp.lt.s32.totalorder %s351_s2, %s351_s2 }
   0xf   :  { %309 = vmatpush3.xpose.msk.msra.mxu0 %vm33_vm0, %v29_v5 }
  0x10   :  { %310 = vmatprep.subr.msk.mxu0 %vm33_vm0, %v28_v7  ;;  %342 = vmatpush3.xpose.msra.mxu1 %v164_v6  ;;  %p358_p3 = por %p357_p2, %p356_p1 }
  0x11   :  { %343 = vmatprep.subr.mxu1 %v163_v20 }
  0x12   :  { %p359_p4 = pnand %p358_p3, %p352_p0 }
  0x13   :  { %311 = vmatpush3.xpose.msk.msra.mxu0 %vm33_vm0, %v28_v7 }
  0x14   :  { %312 = vmatprep.subr.msk.mxu0 %vm33_vm0, %v27_v8  ;;  %344 = vmatpush3.xpose.msra.mxu1 %v163_v20 }
  0x17   :  { %313 = vmatpush3.xpose.msk.msra.mxu0 %vm33_vm0, %v27_v8 }
  0x18   :  { %314 = vmatprep.subr.msk.mxu0 %vm33_vm0, %v26_v9 }
  0x1b   :  { %315 = vmatpush3.xpose.msk.msra.mxu0 %vm33_vm0, %v26_v9 }
  0x1c   :  { %316 = vmatprep.subr.msk.mxu0 %vm33_vm0, %v25_v10 }
  0x1f   :  { %317 = vmatpush3.xpose.msk.msra.mxu0 %vm33_vm0, %v25_v10 }
  0x20   :  { %318 = vmatprep.subr.msk.mxu0 %vm33_vm0, %v24_v11 }
  0x23   :  { %319 = vmatpush3.xpose.msk.msra.mxu0 %vm33_vm0, %v24_v11 }
  0x24   :  { %320 = vmatprep.subr.msk.mxu0 %vm33_vm0, %v23_v12 }
  0x27   :  { %321 = vmatpush3.xpose.msk.msra.mxu0 %vm33_vm0, %v23_v12 }
  0x28   :  { %322 = vmatprep.subr.msk.mxu0 %vm33_vm0, %v22_v13 }
  0x2b   :  { %323 = vmatpush3.xpose.msk.msra.mxu0 %vm33_vm0, %v22_v13 }
  0x2c   :  { %324 = vmatprep.subr.msk.mxu0 %vm33_vm0, %v21_v14 }
  0x2f   :  { %325 = vmatpush3.xpose.msk.msra.mxu0 %vm33_vm0, %v21_v14 }
  0x30   :  { %326 = vmatprep.subr.msk.mxu0 %vm33_vm0, %v20_v15 }
  0x33   :  { %327 = vmatpush3.xpose.msk.msra.mxu0 %vm33_vm0, %v20_v15 }
  0x34   :  { %328 = vmatprep.subr.msk.mxu0 %vm33_vm0, %v19_v16 }
  0x37   :  { %329 = vmatpush3.xpose.msk.msra.mxu0 %vm33_vm0, %v19_v16 }
  0x38   :  { %330 = vmatprep.subr.msk.mxu0 %vm33_vm0, %v18_v17 }
  0x3b   :  { %331 = vmatpush3.xpose.msk.msra.mxu0 %vm33_vm0, %v18_v17 }
  0x3c   :  { %332 = vmatprep.subr.msk.mxu0 %vm33_vm0, %v17_v18 }
  0x3f   :  { %333 = vmatpush3.xpose.msk.msra.mxu0 %vm33_vm0, %v17_v18 }
  0x42   :  { %335 = vmatmul.mubr.msk.f32.vlgmr.msra.gmra.mxu0 %vm33_vm0, %v16_v19 }
  0x43   :  { %334 = vmatprep.mubr.msk.f32.mxu0 %vm33_vm0, %v15_v23 }
 0x102   :  { %v336_v21 = vpop.f32.mrf.mxu0 }
 0x104   :  { %v154_v22 = vpop.f32.mrf.mxu0 }
 0x105   :  { %345 = vmatprep.mubr.f32.mxu1 %v154_v22 }
 0x106   :  { %346 = vmatmul.mubr.f32.vlgmr.msra.gmra.mxu1 %v336_v21 }
 0x1c6   :  { %v347_v24 = vpop.f32.mrf.mxu1 }
 0x1c7   :  { %v239_v25 = vadd.f32 %v347_v24, %v16_v19 }
 0x1c8   :  { %v233_v26 = vpop.f32.mrf.mxu1 }
 0x1c9   :  { %243 = vst.msk [vmem:[#allocation2 + $0x8] sm:$0xff] %vm33_vm0, %v239_v25  ;;  %v234_v27 = vadd.f32 %v233_v26, %v15_v23 }
 0x1cb   :  { %242 = vst.msk [vmem:[#allocation2] sm:$0xff] %vm33_vm0, %v234_v27 }
 0x1cc   :  { %362 = shalt.err (!%p359_p4)
}
 0x1cd   :  { %s374_s0 = smov 128   ;;  %s375_s30 = smov 8  }
 0x1ce   :  { %255 = dma.vmem_to_hbm [thread:$0]  %s250_s29, 256, %s504_s3, [#allocation3], %s374_s0, %s374_s0, %s375_s30  }
 0x1cf   :  { %371 = dma.done.wait [#allocation3], 256  }
 0x1d0   :  { %372 = vsyncadd [#allocation3], 4294967040 }
 0x1d1   :  { %259 = vsyncpa [#allocation3], 1 }

</bundles_post_ra>
